<compile_context>
chip_gen: v7x
topology: tpu7x:2x2x1
jax: 0.10.0
libtpu: 0.0.40
codegen_flags: <defaults>
</compile_context>

<pallas_src>
import jax
import jax.numpy as jnp
from jax.experimental import pallas as pl
from jax.experimental.pallas import tpu as pltpu

_LANES = 128


def _round8(n):
    return ((n + 7) // 8) * 8


# ------------------------------ fused Pallas kernel ------------------------------

def _make_fused_kernel(meta):
    """Build the fused forward kernel (closure over static layout metadata)."""
    B, H, W, R, Rp, outputs, cf = meta["geom"]
    blocks = meta["blocks"]
    m_off = meta["masks"]
    whp_off, whp_cols = meta["whp"]
    fold_off, fold_rows = meta["fold"]
    sel_off = meta["sel"]
    bh_off = meta["bhead"]
    f32 = jnp.float32

    def kernel(x_ref, p_ref, out_ref):
        # Batch-boundary / row-padding masks: lane 0 -> "row above is valid", lane 1 -> "row below is valid".
        masks = p_ref[m_off:m_off + Rp, 0:2]
        mup = masks[:, 0:1]
        mdn = masks[:, 1:2]

        a = x_ref[...]                                   # (Rp, Cin0), rows=(b,h), lanes=channels
        for bk in blocks:
            cout = bk["cout"]
            krows, kcols = bk["wp_shape"]
            wp = p_ref[bk["wp_off"]:bk["wp_off"] + krows, 0:kcols]
            b1 = p_ref[bk["bn_off"]:bk["bn_off"] + 1, 0:cout]      # bn1 shift (scale folded into taps)
            s2 = p_ref[bk["bn_off"] + 1:bk["bn_off"] + 2, 0:cout]  # bn2 scale
            bs = p_ref[bk["bn_off"] + 2:bk["bn_off"] + 3, 0:cout]  # bn2 (+bn3) shift

            # 3x3 conv with W=1, pad=1 -> 3 vertical taps. Row shifts on the XLU, masks on the VPU.
            up = pltpu.roll(a, shift=1, axis=0) * mup        # x[h-1]  (zero at h==0 / batch top)
            dn = pltpu.roll(a, shift=Rp - 1, axis=0) * mdn   # x[h+1]  (zero at h==H-1 / batch bottom)

            if bk["mode"] == "conv_skip":
                # ONE MXU pass: lanes [0,cout) = conv1 taps, lanes [cout,2cout) = 1x1 skip (bn3 scale folded).
                cat = jnp.concatenate([up, a, dn, a], axis=1)
                yb = jnp.dot(cat, wp, preferred_element_type=f32)
                y1 = yb[:, 0:cout]
                ysk = yb[:, cout:2 * cout]
            else:
                cat = jnp.concatenate([up, a, dn], axis=1)
                y1 = jnp.dot(cat, wp, preferred_element_type=f32)
                ysk = a if bk["mode"] == "identity_skip" else None

            y = jnp.maximum(y1 + b1, 0.0) * s2 + bs          # bn1 + ReLU, then bn2 (conv2 output discarded)
            if ysk is not None:
                y = y + ysk                                  # skip branch add
            a = jnp.maximum(y, 0.0)                          # acti2

        # Head (lastConv folded into whp at prep time):
        #   logits[b,o] = sum_{r,c} sel[b,r] * a[r,c] * whp[r, o*cf + c] + bias[o]
        at = jnp.concatenate([a] * outputs, axis=1)          # replicate channels per output on lanes
        prod = at * p_ref[whp_off:whp_off + Rp, 0:whp_cols]
        sel = p_ref[sel_off:sel_off + B, 0:Rp]
        fold = p_ref[fold_off:fold_off + fold_rows, 0:outputs]
        bh = p_ref[bh_off:bh_off + 1, 0:outputs]
        sp = jnp.dot(sel, prod, preferred_element_type=f32)          # (B, outputs*cf) batch reduce
        logits = jnp.dot(sp, fold, preferred_element_type=f32) + bh  # per-output lane sum + bias
        out_ref[...] = 1.0 / (1.0 + jnp.exp(-logits))                # sigmoid (only HBM store)

    return kernel


# ------------------------------ parameter folding / packing (one-time) ------------------------------

def prepare_params(params, *, B, H, W=1, kernel_size=3, stride=1,
                   do_skip=True, do_bn=True, eps=1e-5):
    """Fold BN into weights, pack ALL parameters into one VMEM slab, record static offsets."""
    assert W == 1 and kernel_size == 3 and stride == 1, "layout specialized to W=1, k=3, stride=1"
    R = B * H * W
    Rp = _round8(R)                                   # pad rows to a sublane multiple

    regions = []
    cursor = 0

    def add(arr):
        nonlocal cursor
        arr = jnp.asarray(arr, jnp.float32)
        assert arr.ndim == 2 and arr.shape[1] <= _LANES
        off = cursor
        regions.append((off, arr))
        cursor = _round8(off + arr.shape[0])
        return off

    def bn_affine(bn, c, enabled):
        if not enabled:
            return jnp.ones((c,), jnp.float32), jnp.zeros((c,), jnp.float32)
        s = bn["gamma"] / jnp.sqrt(bn["var"] + eps)
        return s, bn["beta"] - bn["mean"] * s

    # Batch-boundary masks (also zero on padded rows r >= R).
    r = jnp.arange(Rp)
    h = r % H
    valid = r < R
    mup = ((h > 0) & valid).astype(jnp.float32)
    mdn = ((h < H - 1) & valid).astype(jnp.float32)
    m_off = add(jnp.stack([mup, mdn], axis=1))        # (Rp, 2)

    blocks_meta = []
    for i, blk in enumerate(params["blocks"]):
        cout, cin, _, kw = blk["w1"].shape
        ds = do_skip if i == 0 else True              # classifier flags only apply to block 0
        db = do_bn if i == 0 else True
        s1, b1 = bn_affine(blk["bn1"], cout, db)
        s2, b2 = bn_affine(blk["bn2"], cout, db)
        # With W=1 and pad=1 only the middle kW column of the 3x3 filter sees real data.
        taps = jnp.transpose(blk["w1"][:, :, :, kw // 2], (2, 1, 0)) * s1[None, None, :]  # (3,cin,cout)
        if ds and (stride != 1 or cin != cout):       # conv3 + bn3 skip path
            s3, b3 = bn_affine(blk["bn3"], cout, db)
            ws = blk["w3"].reshape(cout, cin).T * s3[None, :]
            wp = jnp.zeros((4 * cin, 2 * cout), jnp.float32)
            wp = wp.at[0 * cin:1 * cin, 0:cout].set(taps[0])
            wp = wp.at[1 * cin:2 * cin, 0:cout].set(taps[1])
            wp = wp.at[2 * cin:3 * cin, 0:cout].set(taps[2])
            wp = wp.at[3 * cin:4 * cin, cout:2 * cout].set(ws)
            mode, bsum = "conv_skip", b2 + b3
        else:
            wp = jnp.concatenate([taps[0], taps[1], taps[2]], axis=0)   # (3*cin, cout)
            mode, bsum = ("identity_skip" if ds else "no_skip"), b2
        wp_off = add(wp)
        bn_off = add(jnp.stack([b1, s2, bsum], axis=0))                 # (3, cout)
        blocks_meta.append(dict(mode=mode, cin=cin, cout=cout,
                                wp_off=wp_off, wp_shape=tuple(wp.shape), bn_off=bn_off))

    cf = params["lastConv_w"].shape[0]
    outputs = params["out_w"].shape[0]
    assert params["out_w"].shape[1] == cf * H * W
    # Fold lastConv (1x1, no bias) into the head weight; pre-permute for the native
    # (rows=(b,h), lanes=channels) layout and replicate per output along lanes.
    lw = params["lastConv_w"].reshape(cf, cf)                     # [co, ci]
    ow = params["out_w"].reshape(outputs, cf, H)                  # [o, co, h]   (Flatten is NCHW)
    whf = jnp.einsum("och,cd->ohd", ow, lw,
                     precision=jax.lax.Precision.HIGHEST)         # [o, h, ci]
    wh_rows = jnp.transpose(whf, (1, 0, 2)).reshape(H, outputs * cf)
    whp = jnp.tile(wh_rows, (B, 1))                               # (R, outputs*cf)
    if Rp > R:
        whp = jnp.concatenate([whp, jnp.zeros((Rp - R, outputs * cf), jnp.float32)], axis=0)
    whp_off = add(whp)

    fold = (jnp.arange(outputs * cf)[:, None] // cf
            == jnp.arange(outputs)[None, :]).astype(jnp.float32)  # (outputs*cf, outputs)
    fold_off = add(fold)

    sel = ((r[None, :] // H == jnp.arange(B)[:, None]) & valid[None, :]).astype(jnp.float32)
    sel_off = add(sel)                                            # (B, Rp)

    bh_off = add(params["out_b"].reshape(1, outputs))             # (1, outputs)

    slab = jnp.zeros((cursor, _LANES), jnp.float32)
    for off, arr in regions:
        slab = slab.at[off:off + arr.shape[0], 0:arr.shape[1]].set(arr)

    meta = {"geom": (B, H, W, R, Rp, outputs, cf), "blocks": blocks_meta,
            "masks": m_off, "whp": (whp_off, outputs * cf),
            "fold": (fold_off, outputs * cf), "sel": sel_off, "bhead": bh_off}
    return {"slab": slab, "meta": meta}


# ------------------------------ single fused pallas_call ------------------------------

def fused_forward(prep, x):
    meta = prep["meta"]
    B, H, W, R, Rp, outputs, cf = meta["geom"]
    assert x.shape[0] == B and x.shape[2] == H and x.shape[3] == W
    C = x.shape[1]
    # Lane-dense activation layout: rows = (b, h, w), lanes = channels; pad rows to a sublane multiple.
    x2d = x.transpose(0, 2, 3, 1).reshape(R, C).astype(jnp.float32)
    if Rp > R:
        x2d = jnp.concatenate([x2d, jnp.zeros((Rp - R, C), jnp.float32)], axis=0)

    kernel = _make_fused_kernel(meta)
    return pl.pallas_call(
        kernel,
        out_shape=jax.ShapeDtypeStruct((B, outputs), jnp.float32),
        in_specs=[pl.BlockSpec(memory_space=pltpu.MemorySpace.VMEM),
                  pl.BlockSpec(memory_space=pltpu.MemorySpace.VMEM)],
        out_specs=pl.BlockSpec(memory_space=pltpu.MemorySpace.VMEM),
    )(x2d, prep["slab"])


def forward(params, x, *, stride=1, kernel_size=3, do_skip=True, do_bn=True):
    """Convenience wrapper: fold/pack params then run the single fused kernel."""
    B, _, H, W = x.shape
    prep = prepare_params(params, B=B, H=H, W=W, kernel_size=kernel_size,
                          stride=stride, do_skip=do_skip, do_bn=do_bn)
    return fused_forward(prep, x)


# ------------------------------ pure-JAX reference (for checking) ------------------------------

def _reference_forward(params, x, *, stride=1, kernel_size=3, do_skip=True, do_bn=True, eps=1e-5):
    hp = jax.lax.Precision.HIGHEST

    def bn(z, p, enabled):
        if not enabled:
            return z
        s = p["gamma"] / jnp.sqrt(p["var"] + eps)
        return z * s[None, :, None, None] + (p["beta"] - p["mean"] * s)[None, :, None, None]

    def conv(z, w, st, pad):
        return jax.lax.conv_general_dilated(
            z, w, window_strides=(st, st), padding=[(pad, pad), (pad, pad)],
            dimension_numbers=("NCHW", "OIHW", "NCHW"), precision=hp)

    out = x
    for i, blk in enumerate(params["blocks"]):
        ds = do_skip if i == 0 else True
        db = do_bn if i == 0 else True
        cout, cin = blk["w1"].shape[0], blk["w1"].shape[1]
        y = jnp.maximum(bn(conv(out, blk["w1"], stride, 1), blk["bn1"], db), 0.0)
        y = bn(y, blk["bn2"], db)                       # conv2 result discarded (original bug)
        if ds:
            if stride != 1 or cin != cout:
                y = y + bn(conv(out, blk["w3"], stride, 0), blk["bn3"], db)
            else:
                y = y + out
        out = jnp.maximum(y, 0.0)
    out = conv(out, params["lastConv_w"], 1, 0)
    out = out.reshape(out.shape[0], -1)                 # Flatten(NCHW)
    logits = jnp.dot(out, params["out_w"].T, precision=hp) + params["out_b"][None, :]
    return jax.nn.sigmoid(logits)


# ------------------------------ deterministic params ------------------------------

class _KeyGen:
    def __init__(self, key):
        self.key = key

    def __call__(self):
        self.key, sub = jax.random.split(self.key)
        return sub


def init_params(key, num_hidden_layers=2, nc=1, nf=8, outputs=2, inDim=6, kernel_size=3):
    kg = _KeyGen(key)
    final_dim = nf * 2 ** (num_hidden_layers - 1)

    def bn_params(c):
        return {
            "gamma": 1.0 + 0.1 * jax.random.normal(kg(), (c,), jnp.float32),
            "beta": 0.1 * jax.random.normal(kg(), (c,), jnp.float32),
            "mean": 0.1 * jax.random.normal(kg(), (c,), jnp.float32),
            "var": 1.0 + 0.1 * jax.random.uniform(kg(), (c,), jnp.float32),
        }

    blocks = []
    in_ch = nc
    for i in range(num_hidden_layers):
        out_ch = nf if i == 0 else nf * 2 ** i
        blocks.append({
            "w1": 0.1 * jax.random.normal(kg(), (out_ch, in_ch, kernel_size, kernel_size), jnp.float32),
            "w3": 0.1 * jax.random.normal(kg(), (out_ch, in_ch, 1, 1), jnp.float32),
            "bn1": bn_params(out_ch),
            "bn2": bn_params(out_ch),
            "bn3": bn_params(out_ch),
        })
        in_ch = out_ch

    return {
        "blocks": blocks,
        "lastConv_w": 0.1 * jax.random.normal(kg(), (final_dim, final_dim, 1, 1), jnp.float32),
        "out_w": 0.1 * jax.random.normal(kg(), (outputs, inDim * final_dim), jnp.float32),
        "out_b": 0.1 * jax.random.normal(kg(), (outputs,), jnp.float32),
        # lastFF / Dropout params omitted: dead branch at dropout=0.0
    }


# --------------------------------- driver -----------------------------------

if __name__ == "__main__":
    key = jax.random.PRNGKey(0)
    k_params, k_x = jax.random.split(key)

    params = init_params(k_params, num_hidden_layers=2, nc=1, nf=8,
                         outputs=2, inDim=6, kernel_size=3)

    # B=2, nc=1 channel, spatial (6, 1) so flatten -> inDim*finalDim = 96
    x = jax.random.normal(k_x, (2, 1, 6, 1), jnp.float32)

    prep = prepare_params(params, B=2, H=6, W=1)     # one-time BN/weight folding + slab packing
    y = fused_forward(prep, x)                       # single fused pallas_call (2 input DMAs)
    y = jax.block_until_ready(y)

    y_ref = _reference_forward(params, x)
    assert y.shape == (2, 2)
    assert bool(jnp.all((y > 0.0) & (y < 1.0)))                      # sigmoid range sanity check
    assert bool(jnp.allclose(y, y_ref, atol=1e-3, rtol=1e-3)), (y, y_ref)
    print("KERNEL_OK")
</pallas_src>

<mosaic_0001>
module attributes {stable_mosaic.version = 11 : i64} {
  func.func @kernel(%arg0: memref<16x1xf32, #tpu.memory_space<vmem>>, %arg1: memref<136x128xf32, #tpu.memory_space<vmem>>, %arg2: memref<2x2xf32, #tpu.memory_space<vmem>>) attributes {dimension_semantics = [], scalar_prefetch = 0 : i64, scratch_operands = 0 : i64, tpu.core_type = #tpu.core_type<tc>} {
    %c0 = arith.constant 0 : index
    %c0_0 = arith.constant 0 : index
    %0 = vector.load %arg1[%c0, %c0_0] : memref<136x128xf32, #tpu.memory_space<vmem>>, vector<16x2xf32>
    %1 = vector.extract_strided_slice %0 {offsets = [0, 0], sizes = [16, 1], strides = [1, 1]} : vector<16x2xf32> to vector<16x1xf32>
    %2 = vector.extract_strided_slice %0 {offsets = [0, 1], sizes = [16, 1], strides = [1, 1]} : vector<16x2xf32> to vector<16x1xf32>
    %c0_1 = arith.constant 0 : index
    %c0_2 = arith.constant 0 : index
    %3 = vector.load %arg0[%c0_1, %c0_2] : memref<16x1xf32, #tpu.memory_space<vmem>>, vector<16x1xf32>
    %c16 = arith.constant 16 : index
    %c0_3 = arith.constant 0 : index
    %4 = vector.load %arg1[%c16, %c0_3] : memref<136x128xf32, #tpu.memory_space<vmem>>, vector<4x16xf32>
    %c24 = arith.constant 24 : index
    %c0_4 = arith.constant 0 : index
    %5 = vector.load %arg1[%c24, %c0_4] : memref<136x128xf32, #tpu.memory_space<vmem>>, vector<1x8xf32>
    %c25 = arith.constant 25 : index
    %c0_5 = arith.constant 0 : index
    %6 = vector.load %arg1[%c25, %c0_5] : memref<136x128xf32, #tpu.memory_space<vmem>>, vector<1x8xf32>
    %c26 = arith.constant 26 : index
    %c0_6 = arith.constant 0 : index
    %7 = vector.load %arg1[%c26, %c0_6] : memref<136x128xf32, #tpu.memory_space<vmem>>, vector<1x8xf32>
    %c1_i32 = arith.constant 1 : i32
    %8 = tpu.dynamic_rotate %3 by %c1_i32 dim 0 : vector<16x1xf32>, i32 -> vector<16x1xf32>
    %9 = arith.mulf %8, %1 : vector<16x1xf32>
    %c15_i32 = arith.constant 15 : i32
    %10 = tpu.dynamic_rotate %3 by %c15_i32 dim 0 : vector<16x1xf32>, i32 -> vector<16x1xf32>
    %11 = arith.mulf %10, %2 : vector<16x1xf32>
    %12 = tpu.concatenate %9, %3, %11, %3 in 1 : vector<16x1xf32>, vector<16x1xf32>, vector<16x1xf32>, vector<16x1xf32> -> vector<16x4xf32>
    %cst = arith.constant dense<0.000000e+00> : vector<16x16xf32>
    %13 = tpu.matmul %12, %4, %cst {dimension_numbers = #tpu.dot_dimension_numbers<[1], [0], [0], [1], [0, 0, 1, 1], [], []>} : vector<16x4xf32>, vector<4x16xf32>, vector<16x16xf32> -> vector<16x16xf32>
    %14 = vector.extract_strided_slice %13 {offsets = [0, 0], sizes = [16, 8], strides = [1, 1]} : vector<16x16xf32> to vector<16x8xf32>
    %15 = vector.extract_strided_slice %13 {offsets = [0, 8], sizes = [16, 8], strides = [1, 1]} : vector<16x16xf32> to vector<16x8xf32>
    %16 = vector.broadcast %5 : vector<1x8xf32> to vector<16x8xf32>
    %17 = arith.addf %14, %16 : vector<16x8xf32>
    %cst_7 = arith.constant 0.000000e+00 : f32
    %18 = vector.broadcast %cst_7 : f32 to vector<16x8xf32>
    %19 = arith.maximumf %17, %18 : vector<16x8xf32>
    %20 = vector.broadcast %6 : vector<1x8xf32> to vector<16x8xf32>
    %21 = arith.mulf %19, %20 : vector<16x8xf32>
    %22 = vector.broadcast %7 : vector<1x8xf32> to vector<16x8xf32>
    %23 = arith.addf %21, %22 : vector<16x8xf32>
    %24 = arith.addf %23, %15 : vector<16x8xf32>
    %cst_8 = arith.constant 0.000000e+00 : f32
    %25 = vector.broadcast %cst_8 : f32 to vector<16x8xf32>
    %26 = arith.maximumf %24, %25 : vector<16x8xf32>
    %c32 = arith.constant 32 : index
    %c0_9 = arith.constant 0 : index
    %27 = vector.load %arg1[%c32, %c0_9] : memref<136x128xf32, #tpu.memory_space<vmem>>, vector<32x32xf32>
    %c64 = arith.constant 64 : index
    %c0_10 = arith.constant 0 : index
    %28 = vector.load %arg1[%c64, %c0_10] : memref<136x128xf32, #tpu.memory_space<vmem>>, vector<1x16xf32>
    %c65 = arith.constant 65 : index
    %c0_11 = arith.constant 0 : index
    %29 = vector.load %arg1[%c65, %c0_11] : memref<136x128xf32, #tpu.memory_space<vmem>>, vector<1x16xf32>
    %c66 = arith.constant 66 : index
    %c0_12 = arith.constant 0 : index
    %30 = vector.load %arg1[%c66, %c0_12] : memref<136x128xf32, #tpu.memory_space<vmem>>, vector<1x16xf32>
    %c1_i32_13 = arith.constant 1 : i32
    %31 = tpu.dynamic_rotate %26 by %c1_i32_13 dim 0 : vector<16x8xf32>, i32 -> vector<16x8xf32>
    %32 = vector.broadcast %1 : vector<16x1xf32> to vector<16x8xf32>
    %33 = arith.mulf %31, %32 : vector<16x8xf32>
    %c15_i32_14 = arith.constant 15 : i32
    %34 = tpu.dynamic_rotate %26 by %c15_i32_14 dim 0 : vector<16x8xf32>, i32 -> vector<16x8xf32>
    %35 = vector.broadcast %2 : vector<16x1xf32> to vector<16x8xf32>
    %36 = arith.mulf %34, %35 : vector<16x8xf32>
    %37 = tpu.concatenate %33, %26, %36, %26 in 1 : vector<16x8xf32>, vector<16x8xf32>, vector<16x8xf32>, vector<16x8xf32> -> vector<16x32xf32>
    %cst_15 = arith.constant dense<0.000000e+00> : vector<16x32xf32>
    %38 = tpu.matmul %37, %27, %cst_15 {dimension_numbers = #tpu.dot_dimension_numbers<[1], [0], [0], [1], [0, 0, 1, 1], [], []>} : vector<16x32xf32>, vector<32x32xf32>, vector<16x32xf32> -> vector<16x32xf32>
    %39 = vector.extract_strided_slice %38 {offsets = [0, 0], sizes = [16, 16], strides = [1, 1]} : vector<16x32xf32> to vector<16x16xf32>
    %40 = vector.extract_strided_slice %38 {offsets = [0, 16], sizes = [16, 16], strides = [1, 1]} : vector<16x32xf32> to vector<16x16xf32>
    %41 = vector.broadcast %28 : vector<1x16xf32> to vector<16x16xf32>
    %42 = arith.addf %39, %41 : vector<16x16xf32>
    %cst_16 = arith.constant 0.000000e+00 : f32
    %43 = vector.broadcast %cst_16 : f32 to vector<16x16xf32>
    %44 = arith.maximumf %42, %43 : vector<16x16xf32>
    %45 = vector.broadcast %29 : vector<1x16xf32> to vector<16x16xf32>
    %46 = arith.mulf %44, %45 : vector<16x16xf32>
    %47 = vector.broadcast %30 : vector<1x16xf32> to vector<16x16xf32>
    %48 = arith.addf %46, %47 : vector<16x16xf32>
    %49 = arith.addf %48, %40 : vector<16x16xf32>
    %cst_17 = arith.constant 0.000000e+00 : f32
    %50 = vector.broadcast %cst_17 : f32 to vector<16x16xf32>
    %51 = arith.maximumf %49, %50 : vector<16x16xf32>
    %52 = tpu.concatenate %51, %51 in 1 : vector<16x16xf32>, vector<16x16xf32> -> vector<16x32xf32>
    %c72 = arith.constant 72 : index
    %c0_18 = arith.constant 0 : index
    %53 = vector.load %arg1[%c72, %c0_18] : memref<136x128xf32, #tpu.memory_space<vmem>>, vector<16x32xf32>
    %54 = arith.mulf %52, %53 : vector<16x32xf32>
    %c120 = arith.constant 120 : index
    %c0_19 = arith.constant 0 : index
    %55 = vector.load %arg1[%c120, %c0_19] : memref<136x128xf32, #tpu.memory_space<vmem>>, vector<2x16xf32>
    %c88 = arith.constant 88 : index
    %c0_20 = arith.constant 0 : index
    %56 = vector.load %arg1[%c88, %c0_20] : memref<136x128xf32, #tpu.memory_space<vmem>>, vector<32x2xf32>
    %c128 = arith.constant 128 : index
    %c0_21 = arith.constant 0 : index
    %57 = vector.load %arg1[%c128, %c0_21] : memref<136x128xf32, #tpu.memory_space<vmem>>, vector<1x2xf32>
    %cst_22 = arith.constant dense<0.000000e+00> : vector<2x32xf32>
    %58 = tpu.matmul %55, %54, %cst_22 {dimension_numbers = #tpu.dot_dimension_numbers<[1], [0], [0], [1], [0, 0, 1, 1], [], []>} : vector<2x16xf32>, vector<16x32xf32>, vector<2x32xf32> -> vector<2x32xf32>
    %cst_23 = arith.constant dense<0.000000e+00> : vector<2x2xf32>
    %59 = tpu.matmul %58, %56, %cst_23 {dimension_numbers = #tpu.dot_dimension_numbers<[1], [0], [0], [1], [0, 0, 1, 1], [], []>} : vector<2x32xf32>, vector<32x2xf32>, vector<2x2xf32> -> vector<2x2xf32>
    %60 = vector.broadcast %57 : vector<1x2xf32> to vector<2x2xf32>
    %61 = arith.addf %59, %60 : vector<2x2xf32>
    %cst_24 = arith.constant 0.000000e+00 : f32
    %62 = vector.broadcast %cst_24 : f32 to vector<2x2xf32>
    %63 = arith.subf %62, %61 : vector<2x2xf32>
    %64 = math.exp %63 : vector<2x2xf32>
    %cst_25 = arith.constant 1.000000e+00 : f32
    %65 = vector.broadcast %cst_25 : f32 to vector<2x2xf32>
    %66 = arith.addf %65, %64 : vector<2x2xf32>
    %cst_26 = arith.constant 1.000000e+00 : f32
    %67 = vector.broadcast %cst_26 : f32 to vector<2x2xf32>
    %68 = arith.divf %67, %66 : vector<2x2xf32>
    %c0_27 = arith.constant 0 : index
    %c0_28 = arith.constant 0 : index
    %69 = vector.load %arg2[%c0_27, %c0_28] : memref<2x2xf32, #tpu.memory_space<vmem>>, vector<2x2xf32>
    tpu.vector_store %arg2[%c0_27, %c0_28], %68 {strides = array<i32>} : memref<2x2xf32, #tpu.memory_space<vmem>>, vector<2x2xf32>,
    return
  }
}

</mosaic_0001>

<bundles_post_ra>
// kernel: tpu_custom_call.1
= control target key start
LH: loop header
LB: loop body
LE: loop exit
PB: predicated region body
PF: predicated region fallthrough
CT: control target
= control target key end

     0   :  { %7 = vsyncpa [#allocation3], 0  ;;  %s847_s0 = inlined_call_operand.vmem [shape: f32[16,1], index: 0, kind: input, shape index: {}]   ;;  %s848_s1 = inlined_call_operand.hbm [shape: f32[136,128], index: 1, kind: input, shape index: {}]   ;;  %s849_s2 = inlined_call_operand.hbm [shape: f32[2,2], index: 2, kind: output, shape index: {}]  }
   0x1   :  { %8 = vsyncpa [#allocation4], 0  ;;  %s736_s9 = smov [#allocation2]   ;;  %s688_s13 = scalar_lea.hbm %s848_s1, 2176 }
   0x2   :  { %s16_s10 = sshll.u32 %s736_s9, 4  ;;  %p689_p0 = scmp.ne.s32.totalorder %s848_s1, %s688_s13  ;;  %s17_s10 = int_to_ptr.vmem [resolvable:$true] %s16_s10 }
   0x3   :  { %p692_p1 = scmp.lt.u32.totalorder %s688_s13, %s848_s1 }
   0x5   :  { %p694_p2 = pnand %p692_p1, %p689_p0 }
   0x7   :  { %697 = shalt.err (!%p694_p2)
}
   0x8   :  { %s698_s18 = scalar_lea.vmem %s17_s10, 2176  ;;  %p703_p4 = scmp.lt.s32.totalorder %s17_s10, %s17_s10 }
   0x9   :  { %p699_p3 = scmp.ne.s32.totalorder %s17_s10, %s698_s18  ;;  %p704_p5 = scmp.lt.s32.totalorder %s698_s18, %s698_s18 }
   0xb   :  { %p705_p6 = por %p704_p5, %p703_p4 }
   0xd   :  { %p706_p7 = pnand %p705_p6, %p699_p3 }
   0xf   :  { %709 = shalt.err (!%p706_p7)
}
  0x10   :  { %s737_s19 = smov 128   ;;  %s738_s20 = smov 8  }
  0x11   :  { %22 = dma.hbm_to_vmem [thread:$0]  %s848_s1, 2176, %s17_s10, [#allocation3], %s737_s19, %s737_s19, %s738_s20  }
  0x12   :  { %732 = dma.done.wait [#allocation3], 2176  }
  0x13   :  { %733 = vsyncadd [#allocation3], 4294965120  ;;  %v781_v0 = vld [vmem:[#allocation2] sm:$0xff]  ;;  %s739_s25 = smov 127   ;;  %s740_s26 = smov 1   ;;  %v787_v2 = vld [vmem:[#allocation2 + $0x8] sm:$0xff]  ;;  %v36_v4 = vlaneseq }
  0x14   :  { %v28_v1 = vld [vmem:[%s847_s0] sm:$0xff]  ;;  %50 = vrot.lane.b32.xlu0 %v781_v0, %s739_s25  ;;  %v29_v3 = vld [vmem:[%s847_s0 + $0x8] sm:$0xff]  ;;  %v30_v8 = vld [vmem:[#allocation2 + $0x10] sm:$0xf]  ;;  %vm96_vm1 = vcmask 1043456   ;;  %s741_s0 = smov 2  }
  0x15   :  { %60 = vrot.lane.b32.xlu1 %v28_v1, %s740_s26  ;;  %v793_v5 = vshrl.u32 %v36_v4, 7  ;;  %v43_v6 = vrot.slane %v28_v1, 1  ;;  %v44_v7 = vrot.slane %v29_v3, 1  ;;  %611 = vmatprep.subr.msk.mxu1 %vm96_vm1, %v30_v8  ;;  %s742_s1 = smov 3   ;;  %v34_v15 = vrot.slane %v28_v1, 7  ;;  %s744_s29 = smov 120  }
  0x16   :  { %612 = vmatpush3.msk.msra.mxu1 %vm96_vm1, %v30_v8  ;;  %v35_v16 = vrot.slane %v29_v3, 7  ;;  %vm80_vm3 = vcmask 7168   ;;  %vm83_vm4 = vcmask 15360   ;;  %vm86_vm5 = vcmask 23552   ;;  %v583_v37 = vld [vmem:[#allocation2 + $0x18] ss:$0 sm:$0xff] }
  0x17   :  { %vm45_vm0 = vcmp.lt.s32.totalorder %v793_v5, 7  ;;  %vm38_vm2 = vcmp.lt.s32.totalorder %v793_v5, 1  ;;  %vm89_vm6 = vcmask 31744   ;;  %v743_v33 = vmov 1   ;;  %v584_v41 = vld [vmem:[#allocation2 + $0x19] ss:$0 sm:$0xff] }
  0x18   :  { %52 = vrot.lane.b32.xlu0 %v787_v2, %s739_s25  ;;  %v46_v9 = vsel %vm45_vm0, %v43_v6, %v44_v7  ;;  %v47_v12 = vsel %vm45_vm0, %v44_v7, %v43_v6  ;;  %v40_v18 = vsel %vm38_vm2, %v35_v16, %v34_v15  ;;  %v39_v21 = vsel %vm38_vm2, %v34_v15, %v35_v16  ;;  %v585_v45 = vld [vmem:[#allocation2 + $0x1a] ss:$0 sm:$0xff]  ;;  %v207_v46 = vld [vmem:[#allocation2 + $0x20] sm:$0xff]  ;;  %v208_v47 = vld [vmem:[#allocation2 + $0x28] sm:$0xff]  ;;  %s746_s30 = smov 16   ;;  %s747_s3 = smov 24  }
  0x19   :  { %62 = vrot.lane.b32.xlu1 %v29_v3, %s740_s26  ;;  %v41_v20 = vmul.f32 %v40_v18, %v781_v0  ;;  %v42_v24 = vmul.f32 %v39_v21, %v787_v2  ;;  %679 = vset.pattern.permute.xlu0 %v743_v33  ;;  %v745_v36 = vmov 0   ;;  %v645_v48 = vpack.c.bf16 %v208_v47, %v207_v46  ;;  %v209_v61 = vld [vmem:[#allocation2 + $0x30] sm:$0xff]  ;;  %v210_v62 = vld [vmem:[#allocation2 + $0x38] sm:$0xff]  ;;  %s748_s4 = smov 112   ;;  %v397_v47 = vld [vmem:[#allocation2 + $0x48] sm:$0xff]  ;;  %s752_s5 = smov [#allocation5]  }
  0x1a   :  { %680 = vset.pattern.permute.xlu1 %v743_v33  ;;  %vm264_vm7 = vcmask 64512   ;;  %vm267_vm8 = vcmask 130048   ;;  %vm270_vm9 = vcmask 195584   ;;  %vm273_vm10 = vcmask 261120   ;;  %s571_s6 = sshll.u32 %s752_s5, 4  ;;  %s572_s6 = int_to_ptr.vmem [resolvable:$true] %s571_s6 }
  0x1b   :  { %646 = vmatprep.subr.bf16.mxu1 %v645_v48  ;;  %vm750_vm11 = vmmov 0   ;;  %vm563_vm12 = vcmask 9216   ;;  %s710_s7 = scalar_lea.vmem %s572_s6, 32  ;;  %p715_p9 = scmp.lt.s32.totalorder %s572_s6, %s572_s6 }
  0x1c   :  { %p711_p8 = scmp.ne.s32.totalorder %s572_s6, %s710_s7  ;;  %p716_p10 = scmp.lt.s32.totalorder %s710_s7, %s710_s7 }
  0x1e   :  { %p717_p11 = por %p716_p10, %p715_p9 }
  0x20   :  { %p718_p12 = pnand %p717_p11, %p711_p8 }
  0x86   :  { %v51_v10 = vpop.permute.xlu0 %50 }
  0x87   :  { %v56_v11 = vmul.f32 %v51_v10, %v46_v9  ;;  %v61_v17 = vpop.permute.xlu1 %60 }
  0x88   :  { %v81_v23 = vsel %vm80_vm3, %v41_v20, %v61_v17 }
  0x89   :  { %68 = vrot.lane.b32.xlu0 %v56_v11, %s741_s0 }
  0x8a   :  { %v53_v13 = vpop.permute.xlu0 %52 }
  0x8b   :  { %v57_v14 = vmul.f32 %v53_v13, %v47_v12  ;;  %v63_v19 = vpop.permute.xlu1 %62 }
  0x8c   :  { %v82_v29 = vsel %vm80_vm3, %v42_v24, %v63_v19 }
  0x8d   :  { %74 = vrot.lane.b32.xlu0 %v28_v1, %s742_s1  ;;  %70 = vrot.lane.b32.xlu1 %v57_v14, %s741_s0 }
  0x91   :  { %76 = vrot.lane.b32.xlu1 %v29_v3, %s742_s1  ;;  %v649_v3 = vpack.c.bf16 %v210_v62, %v209_v61 }
  0xfb   :  { %v69_v22 = vpop.permute.xlu0 %68 }
  0xfc   :  { %v84_v25 = vsel %vm83_vm4, %v81_v23, %v69_v22 }
  0xff   :  { %v71_v26 = vpop.permute.xlu1 %70  ;;  %v75_v27 = vpop.permute.xlu0 %74 }
 0x100   :  { %v87_v28 = vsel %vm86_vm5, %v84_v25, %v75_v27  ;;  %v85_v30 = vsel %vm83_vm4, %v82_v29, %v71_v26  ;;  %v588_v26 = vld [vmem:[#allocation2 + $0x40] ss:$0 sm:$0xff] }
 0x101   :  { %613 = vmatprep.mubr.msk.f32.mxu1 %vm89_vm6, %v87_v28 }
 0x103   :  { %v77_v31 = vpop.permute.xlu1 %76 }
 0x104   :  { %v88_v32 = vsel %vm86_vm5, %v85_v30, %v77_v31  ;;  %v589_v30 = vld [vmem:[#allocation2 + $0x41] ss:$0 sm:$0xff] }
 0x105   :  { %614 = vmatmul.mubr.msk.f32.vlgmr.msra.gmra.mrb[0].mxu1 %vm89_vm6, %v88_v32 }
 0x106   :  { %648 = vmatpush3.bf16.msra.mxu1 %v645_v48 }
 0x107   :  { %650 = vmatprep.subr.bf16.mxu1 %v649_v3 }
 0x10a   :  { %652 = vmatpush3.bf16.msra.mxu1 %v649_v3 }
 0x1d8   :  { %v615_v34 = vpop.f32.mrb[0].mxu1 }
 0x1d9   :  { %199 = vrot.lane.b32.xlu1 %v615_v34, %s744_s29  ;;  %v166_v35 = vpop.f32.mrb[1].mxu1  ;;  %v180_v38 = vadd.f32 %v615_v34, %v583_v37 }
 0x1da   :  { %197 = vrot.lane.b32.xlu0 %v166_v35, %s744_s29  ;;  %v179_v39 = vadd.f32 %v583_v37, %v166_v35  ;;  %v590_v35 = vld [vmem:[#allocation2 + $0x42] ss:$0 sm:$0xff]  ;;  %v751_v37 = vmov 0.0  }
 0x1db   :  { %v182_v40 = vmax.f32 %v180_v38, 0.0  ;;  %631 = vmatprep.mubr.msk.f32.mxu0 %vm750_vm11, %v751_v37 }
 0x1dc   :  { %v181_v42 = vmax.f32 %v179_v39, 0.0 }
 0x1dd   :  { %237 = vperm.xlu1 %680, %v787_v2   ;;  %v188_v43 = vmul.f32 %v584_v41, %v182_v40 }
 0x1de   :  { %233 = vperm.xlu0 %679, %v781_v0   ;;  %v187_v44 = vmul.f32 %v584_v41, %v181_v42 }
 0x1df   :  { %v194_v49 = vadd.f32 %v585_v45, %v188_v43 }
 0x1e0   :  { %v193_v51 = vadd.f32 %v585_v45, %v187_v44  ;;  %v398_v45 = vld [vmem:[#allocation2 + $0x50] sm:$0xff] }
 0x1e1   :  { %681 = vset.pattern.permute.xlu1 %v745_v36 }
 0x1e2   :  { %219 = vperm.xlu1 %681, %v781_v0   ;;  %682 = vset.pattern.permute.xlu0 %v745_v36 }
 0x1e3   :  { %223 = vperm.xlu0 %682, %v787_v2  }
 0x1e7   :  { %683 = vset.pattern.permute.xlu0 %v743_v33  ;;  %v749_v33 = vmov 0.0|0.0  }
 0x1e8   :  { %653 = vmatprep.subr.bf16.mxu0 %v749_v33 }
 0x24b   :  { %v200_v50 = vpop.permute.xlu1 %199 }
 0x24c   :  { %v204_v52 = vadd.f32 %v200_v50, %v194_v49  ;;  %v198_v53 = vpop.permute.xlu0 %197 }
 0x24d   :  { %v203_v54 = vadd.f32 %v198_v53, %v193_v51  ;;  %v402_v53 = vld [vmem:[#allocation2 + $0x58] sm:$0xff] }
 0x24e   :  { %v206_v55 = vmax.f32 %v204_v52, 0.0 }
 0x24f   :  { %v205_v56 = vmax.f32 %v203_v54, 0.0  ;;  %v403_v54 = vld [vmem:[#allocation2 + $0x60] sm:$0xff] }
 0x250   :  { %246 = vrot.lane.b32.xlu1 %v206_v55, %s738_s20  ;;  %v229_v57 = vrot.slane %v206_v55, 1  ;;  %v215_v58 = vrot.slane %v206_v55, 7 }
 0x251   :  { %v228_v59 = vrot.slane %v205_v56, 1  ;;  %v214_v60 = vrot.slane %v205_v56, 7 }
 0x253   :  { %v231_v63 = vsel %vm45_vm0, %v229_v57, %v228_v59  ;;  %v230_v0 = vsel %vm45_vm0, %v228_v59, %v229_v57  ;;  %v217_v1 = vsel %vm38_vm2, %v215_v58, %v214_v60  ;;  %v216_v2 = vsel %vm38_vm2, %v214_v60, %v215_v58  ;;  %v404_v58 = vld [vmem:[#allocation2 + $0x68] sm:$0xff]  ;;  %v405_v59 = vld [vmem:[#allocation2 + $0x70] sm:$0xff] }
 0x254   :  { %244 = vrot.lane.b32.xlu1 %v205_v56, %s738_s20  ;;  %v657_v57 = vpack.c.bf16 %v403_v54, %v402_v53  ;;  %v660_v60 = vpack.c.bf16 %v405_v59, %v404_v58 }
 0x25c   :  { %v238_v4 = vpop.permute.xlu1 %237 }
 0x25d   :  { %v241_v6 = vmul.f32 %v238_v4, %v231_v63  ;;  %v234_v7 = vpop.permute.xlu0 %233  ;;  %v592_v63 = vld [vmem:[#allocation2 + $0x80] ss:$0 sm:$0xff] }
 0x25e   :  { %v240_v8 = vmul.f32 %v234_v7, %v230_v0 }
 0x25f   :  { %254 = vrot.lane.b32.xlu1 %v241_v6, %s746_s30 }
 0x260   :  { %252 = vrot.lane.b32.xlu0 %v240_v8, %s746_s30 }
 0x261   :  { %v220_v9 = vpop.permute.xlu1 %219 }
 0x262   :  { %v224_v11 = vpop.permute.xlu0 %223  ;;  %v226_v14 = vmul.f32 %v220_v9, %v217_v1 }
 0x263   :  { %260 = vrot.lane.b32.xlu1 %v206_v55, %s747_s3  ;;  %v227_v15 = vmul.f32 %v224_v11, %v216_v2 }
 0x264   :  { %258 = vrot.lane.b32.xlu0 %v205_v56, %s747_s3  ;;  %v401_v56 = vld [vmem:[#allocation2 + $0x78] sm:$0x3] }
 0x2c2   :  { %v247_v5 = vpop.permute.xlu1 %246 }
 0x2c3   :  { %v266_v18 = vsel %vm264_vm7, %v227_v15, %v247_v5 }
 0x2c6   :  { %v245_v10 = vpop.permute.xlu1 %244 }
 0x2c7   :  { %v265_v16 = vsel %vm264_vm7, %v226_v14, %v245_v10 }
 0x2d1   :  { %v255_v12 = vpop.permute.xlu1 %254 }
 0x2d2   :  { %v253_v13 = vpop.permute.xlu0 %252  ;;  %v269_v21 = vsel %vm267_vm8, %v266_v18, %v255_v12 }
 0x2d3   :  { %v268_v19 = vsel %vm267_vm8, %v265_v16, %v253_v13 }
 0x2d5   :  { %v261_v17 = vpop.permute.xlu1 %260 }
 0x2d6   :  { %v259_v20 = vpop.permute.xlu0 %258  ;;  %v272_v23 = vsel %vm270_vm9, %v269_v21, %v261_v17 }
 0x2d7   :  { %v271_v22 = vsel %vm270_vm9, %v268_v19, %v259_v20 }
 0x2d8   :  { %624 = vmatprep.mubr.msk.f32.mxu1 %vm273_vm10, %v271_v22 }
 0x2d9   :  { %625 = vmatmul.mubr.msk.f32.vlgmr.msra.gmra.mrb[2].mxu1 %vm273_vm10, %v272_v23 }
 0x3ac   :  { %v626_v24 = vpop.f32.mrb[2].mxu1 }
 0x3ad   :  { %379 = vrot.lane.b32.xlu1 %v626_v24, %s748_s4  ;;  %v346_v25 = vpop.f32.mrb[3].mxu1  ;;  %v360_v27 = vadd.f32 %v626_v24, %v588_v26 }
 0x3ae   :  { %377 = vrot.lane.b32.xlu0 %v346_v25, %s748_s4  ;;  %v359_v28 = vadd.f32 %v588_v26, %v346_v25 }
 0x3af   :  { %v362_v29 = vmax.f32 %v360_v27, 0.0 }
 0x3b0   :  { %v361_v31 = vmax.f32 %v359_v28, 0.0 }
 0x3b1   :  { %v368_v32 = vmul.f32 %v589_v30, %v362_v29 }
 0x3b2   :  { %v367_v34 = vmul.f32 %v589_v30, %v361_v31 }
 0x3b3   :  { %v374_v36 = vadd.f32 %v590_v35, %v368_v32 }
 0x3b4   :  { %v373_v39 = vadd.f32 %v590_v35, %v367_v34 }
 0x41f   :  { %v380_v38 = vpop.permute.xlu1 %379 }
 0x420   :  { %v384_v40 = vadd.f32 %v380_v38, %v374_v36  ;;  %v378_v41 = vpop.permute.xlu0 %377 }
 0x421   :  { %v383_v42 = vadd.f32 %v378_v41, %v373_v39 }
 0x422   :  { %v386_v43 = vmax.f32 %v384_v40, 0.0 }
 0x423   :  { %v385_v44 = vmax.f32 %v383_v42, 0.0 }
 0x424   :  { %391 = vrot.lane.b32.xlu1 %v386_v43, %s746_s30 }
 0x425   :  { %389 = vrot.lane.b32.xlu0 %v385_v44, %s746_s30 }
 0x496   :  { %v392_v46 = vpop.permute.xlu1 %391 }
 0x497   :  { %v396_v48 = vsel %vm267_vm8, %v386_v43, %v392_v46  ;;  %v390_v49 = vpop.permute.xlu0 %389 }
 0x498   :  { %v400_v50 = vmul.f32 %v398_v45, %v396_v48  ;;  %v395_v51 = vsel %vm267_vm8, %v385_v44, %v390_v49 }
 0x499   :  { %v399_v52 = vmul.f32 %v397_v47, %v395_v51 }
 0x49b   :  { %v654_v55 = vpack.c.bf16 %v400_v50, %v399_v52 }
 0x49d   :  { %655 = vmatpush3.bf16.msra.mxu0 %v654_v55 }
 0x49e   :  { %656 = vmatprep.subr.bf16.mxu0 %v749_v33 }
 0x4a0   :  { %632 = vmatmul.mubr.msk.f32.vlgmr.msra.gmra.mrb[0].mxu0 %vm267_vm8, %v401_v56 }
 0x4a1   :  { %658 = vmatpush3.bf16.msra.mxu0 %v657_v57  ;;  %642 = vmatprep.mubr.msk.f32.mxu0 %vm750_vm11, %v751_v37 }
 0x4a2   :  { %659 = vmatprep.subr.bf16.mxu0 %v749_v33 }
 0x4a5   :  { %661 = vmatpush3.bf16.msra.mxu0 %v660_v60 }
 0x573   :  { %v476_v61 = vpop.f32.mrb[0].mxu0 }
 0x574   :  { %v633_v62 = vpop.f32.mrb[1].mxu0  ;;  %643 = vmatmul.mubr.msk.f32.vlgmr.msra.gmra.mrb[2].mxu0 %vm273_vm10, %v476_v61 }
 0x647   :  { %v553_v0 = vpop.f32.mrb[2].mxu0 }
 0x648   :  { %v554_v1 = vadd.f32 %v592_v63, %v553_v0  ;;  %v644_v2 = vpop.f32.mrb[3].mxu0 }
 0x64a   :  { %v557_v3 = vsub.f32 0.0, %v554_v1 }
 0x64c   :  { %v558_v4 = vmul.f32 1.442695, %v557_v3 }
 0x64e   :  { %684 = vpow2.f32 %v558_v4 }
 0x658   :  { %v685_v6 = vpop.eup %684 }
 0x659   :  { %v560_v7 = vadd.f32 1.0, %v685_v6 }
 0x65b   :  { %686 = vrcp.f32 %v560_v7 }
 0x665   :  { %v687_v8 = vpop.eup %686 }
 0x666   :  { %564 = vst.msk [vmem:[#allocation5] sm:$0x3] %vm563_vm12, %v687_v8 }
 0x667   :  { %721 = shalt.err (!%p718_p12)
}
 0x668   :  { %s722_s10 = scalar_lea.hbm %s849_s2, 32 }
 0x669   :  { %p723_p13 = scmp.ne.s32.totalorder %s849_s2, %s722_s10  ;;  %p726_p0 = scmp.lt.u32.totalorder %s722_s10, %s849_s2 }
 0x66b   :  { %p728_p1 = pnand %p726_p0, %p723_p13 }
 0x66d   :  { %731 = shalt.err (!%p728_p1)
}
 0x66e   :  { %574 = dma.vmem_to_hbm [thread:$0]  %s572_s6, 32, %s849_s2, [#allocation4]  }
 0x66f   :  { %734 = dma.done.wait [#allocation4], 32  }
 0x670   :  { %735 = vsyncadd [#allocation4], 4294967264 }
 0x671   :  { %578 = vsyncpa [#allocation3], 1 }
 0x672   :  { %579 = vsyncpa [#allocation4], 1 }

</bundles_post_ra>
